<compile_context>
chip_gen: v5e
topology: v5e:2x2
jax: 0.10.0
libtpu: 0.0.40
codegen_flags: <defaults>
</compile_context>

<pallas_src>
import functools
import math

import jax
import jax.numpy as jnp
from jax.experimental import pallas as pl
from jax.experimental.pallas import tpu as pltpu

# ----- Module hyperparameters (NeuralNet.__init__) -----
INPUT_DIM = 2
OUTPUT_DIM = 1
N_HIDDEN_LAYERS = 4          # -> 3 hidden (neurons x neurons) layers
NEURONS = 32
RESIDUAL = True
RETRAIN_SEED = 0


def _round_up(x, m):
    return ((x + m - 1) // m) * m


def _choose_tiling(batch, block_batch):
    """Lane-aligned batch tile with minimal tail padding.

    Keeps the block count even (>=2) whenever the batch spans more than one
    128-lane vreg so v7x's two TensorCores stay balanced (no-op on v5e/v6e).
    """
    block_batch = max(128, _round_up(block_batch, 128))   # enforce 128-lane multiple
    cols = _round_up(batch, 128)
    n_blocks = pl.cdiv(cols, block_batch)
    if cols >= 256:
        n_blocks = max(n_blocks, 2)
        if n_blocks % 2:
            n_blocks += 1
    tb = _round_up(pl.cdiv(batch, n_blocks), 128)
    n_blocks = pl.cdiv(batch, tb)      # re-derive: 128-rounding can drop a block
    return tb, n_blocks


def _mlp_kernel(xT_ref, w_in_ref, b_in_ref, w_hid_ref, b_hid_ref,
                w_outT_ref, b_out_ref, oT_ref, *,
                n_hidden_layers, residual, mxu_dtype):
    xT = xT_ref[...]                                     # (IN, TB) f32
    w_in = w_in_ref[...]                                 # (NEURONS, IN) PyTorch layout
    in_dim = xT.shape[0]

    # ---- Input layer: K = IN (=2) is tiny -> VPU broadcast mul-add, skip MXU.
    pre = w_in[:, 0:1] * xT[0:1, :]                      # (NEURONS, TB)
    for k in range(1, in_dim):
        pre = pre + w_in[:, k:k + 1] * xT[k:k + 1, :]
    h = jnp.tanh(pre + b_in_ref[...])                    # (NEURONS, TB) f32

    # ---- Hidden layers: (32,32) @ (32,TB) MXU dots, f32 accumulation.
    # Weights were pre-cast to mxu_dtype once in the wrapper; only the streamed
    # activation is cast here.  tanh / bias / residual stay f32 (no bf16
    # VPU/EUP on v5e).
    for k in range(n_hidden_layers - 1):
        z = jnp.tanh(
            jnp.dot(w_hid_ref[k], h.astype(mxu_dtype),
                    preferred_element_type=jnp.float32)
            + b_hid_ref[k])                              # (NEURONS, 1) broadcasts
        h = z + h if residual else z

    # ---- Output layer: M = OUT (=1) -> VPU broadcast multiply + sublane
    # reduction (XLU), NOT an MXU dot (an M=1 dot costs a full layer's pushes).
    w_outT = w_outT_ref[...]                             # (NEURONS, OUT)
    out_dim = w_outT.shape[1]
    rows = [jnp.sum(w_outT[:, j:j + 1] * h, axis=0, keepdims=True)
            for j in range(out_dim)]
    oT = rows[0] if out_dim == 1 else jnp.concatenate(rows, axis=0)
    oT_ref[...] = (oT + b_out_ref[...]).astype(oT_ref.dtype)


def neural_net_forward(x, params, *, n_hidden_layers=N_HIDDEN_LAYERS,
                       residual=RESIDUAL, block_batch=8192,
                       mxu_dtype=jnp.float32, vmem_limit_bytes=None):
    """Pallas forward pass of NeuralNet. x: (batch, input_dim) float32."""
    w_in, b_in, w_hid, b_hid, w_out, b_out = params
    batch, in_dim = x.shape
    neurons = w_in.shape[0]
    out_dim = w_out.shape[0]
    n_hid_stack = w_hid.shape[0]

    tb, num_blocks = _choose_tiling(batch, block_batch)
    padded = tb * num_blocks

    # Only wrapper-side data movement: a tiny (in_dim, batch) transpose and, if
    # the batch does not tile evenly, a single jnp.pad (no zeros+scatter copy).
    xT = x.T
    if padded != batch:
        xT = jnp.pad(xT, ((0, 0), (0, padded - batch)))

    # Pre-cast MXU weight operands once (not per grid step).  Output weights go
    # to the VPU path as a (neurons, out_dim) column and stay f32.
    w_hid_mxu = w_hid.astype(mxu_dtype)
    w_outT = w_out.T

    kernel = functools.partial(
        _mlp_kernel, n_hidden_layers=n_hidden_layers, residual=residual,
        mxu_dtype=mxu_dtype)

    n_hid = n_hidden_layers - 1
    flops = 2 * batch * (neurons * in_dim + n_hid * neurons * neurons
                         + neurons * out_dim)
    transcendentals = batch * neurons * n_hidden_layers
    param_bytes = 4 * int(w_in.size + b_in.size + w_hid.size + b_hid.size
                          + w_out.size + b_out.size)
    bytes_accessed = 4 * batch * (in_dim + out_dim) + param_bytes

    grid_spec = pltpu.PrefetchScalarGridSpec(
        num_scalar_prefetch=0,
        grid=(num_blocks,),
        in_specs=[
            # x^T streams over the batch grid.
            pl.BlockSpec((in_dim, tb), lambda i: (0, i)),
            # Weights / biases: constant index_map -> VMEM-resident across steps.
            pl.BlockSpec((neurons, in_dim), lambda i: (0, 0)),
            pl.BlockSpec((neurons, 1), lambda i: (0, 0)),
            pl.BlockSpec((n_hid_stack, neurons, neurons), lambda i: (0, 0, 0)),
            pl.BlockSpec((n_hid_stack, neurons, 1), lambda i: (0, 0, 0)),
            pl.BlockSpec((neurons, out_dim), lambda i: (0, 0)),
            pl.BlockSpec((out_dim, 1), lambda i: (0, 0)),
        ],
        out_specs=pl.BlockSpec((out_dim, tb), lambda i: (0, i)),
    )

    outT = pl.pallas_call(
        kernel,
        out_shape=jax.ShapeDtypeStruct((out_dim, padded), jnp.float32),
        grid_spec=grid_spec,
        compiler_params=pltpu.CompilerParams(
            dimension_semantics=("parallel",),           # v7x: shard batch over TCs
            vmem_limit_bytes=vmem_limit_bytes),
        cost_estimate=pl.CostEstimate(
            flops=flops, transcendentals=transcendentals,
            bytes_accessed=bytes_accessed),
    )(xT, w_in, b_in, w_hid_mxu, b_hid, w_outT, b_out)

    # Back to (batch, out_dim) row-major; drop padding.
    return outT[:, :batch].T


# -------- parameter init (matches nn.init.xavier_uniform_, tanh gain) --------
def _xavier_uniform(key, shape, gain):
    # shape = (fan_out, fan_in)  -- PyTorch nn.Linear weight layout.
    fan_out, fan_in = shape
    bound = gain * math.sqrt(6.0 / (fan_in + fan_out))
    return jax.random.uniform(key, shape, jnp.float32, minval=-bound, maxval=bound)


def init_params(seed=RETRAIN_SEED, *, input_dim=INPUT_DIM, output_dim=OUTPUT_DIM,
                n_hidden_layers=N_HIDDEN_LAYERS, neurons=NEURONS):
    """Deterministic xavier-uniform init with tanh gain (5/3); biases = 0.

    Weights in PyTorch layout (out_features, in_features); biases as
    (out_features, 1) columns so they broadcast over the lane (batch) axis.
    """
    gain = 5.0 / 3.0  # nn.init.calculate_gain('tanh')
    key = jax.random.PRNGKey(seed)
    k_in, k_hid, k_out = jax.random.split(key, 3)

    w_in = _xavier_uniform(k_in, (neurons, input_dim), gain)
    b_in = jnp.zeros((neurons, 1), jnp.float32)

    n_hid = n_hidden_layers - 1
    if n_hid > 0:
        hid_keys = jax.random.split(k_hid, n_hid)
        w_hid = jnp.stack(
            [_xavier_uniform(hid_keys[i], (neurons, neurons), gain)
             for i in range(n_hid)])
        b_hid = jnp.zeros((n_hid, neurons, 1), jnp.float32)
    else:
        # Dummy (never read in the kernel) so BlockSpecs stay well-formed.
        w_hid = jnp.zeros((1, neurons, neurons), jnp.float32)
        b_hid = jnp.zeros((1, neurons, 1), jnp.float32)

    w_out = _xavier_uniform(k_out, (output_dim, neurons), gain)
    b_out = jnp.zeros((output_dim, 1), jnp.float32)
    return (w_in, b_in, w_hid, b_hid, w_out, b_out)


def _ref_forward(x, params, *, n_hidden_layers=N_HIDDEN_LAYERS, residual=RESIDUAL):
    """Pure-JAX reference matching PyTorch semantics (x @ W.T + b)."""
    w_in, b_in, w_hid, b_hid, w_out, b_out = params
    h = jnp.tanh(x @ w_in.T + b_in[:, 0])
    for k in range(n_hidden_layers - 1):
        z = jnp.tanh(h @ w_hid[k].T + b_hid[k][:, 0])
        h = z + h if residual else z
    return h @ w_out.T + b_out[:, 0]


if __name__ == "__main__":
    params = init_params()

    key = jax.random.PRNGKey(0)
    k_small, k_big = jax.random.split(key)

    # Small batch: single 128-lane block with a masked/padded tail.
    x_small = jax.random.normal(k_small, (8, INPUT_DIM), jnp.float32)
    out_small = jax.block_until_ready(neural_net_forward(x_small, params))
    ref_small = _ref_forward(x_small, params)
    assert out_small.shape == (8, OUTPUT_DIM)
    assert jnp.allclose(out_small, ref_small, atol=1e-4, rtol=1e-4)

    # Larger batch: exercises the even-count batch grid (2 x 1280) + tail padding.
    x_big = jax.random.normal(k_big, (2500, INPUT_DIM), jnp.float32)
    out_big = jax.block_until_ready(neural_net_forward(x_big, params))
    ref_big = _ref_forward(x_big, params)
    assert out_big.shape == (2500, OUTPUT_DIM)
    assert jnp.allclose(out_big, ref_big, atol=1e-4, rtol=1e-4)

    # Optional bf16-MXU fast path (perf review #2): same semantics, reduced MXU
    # push count; looser tolerance against the f32 reference by construction.
    out_bf16 = jax.block_until_ready(
        neural_net_forward(x_big, params, mxu_dtype=jnp.bfloat16))
    assert out_bf16.shape == (2500, OUTPUT_DIM)
    assert bool(jnp.all(jnp.isfinite(out_bf16)))
    assert float(jnp.max(jnp.abs(out_bf16 - ref_big))) < 0.5

    print("KERNEL_OK")
</pallas_src>

<mosaic_0001>
module attributes {stable_mosaic.version = 11 : i64} {
  func.func @_mlp_kernel(%arg0: i32, %arg1: memref<2x128xf32, #tpu.memory_space<vmem>>, %arg2: memref<32x2xf32, #tpu.memory_space<vmem>>, %arg3: memref<32x1xf32, #tpu.memory_space<vmem>>, %arg4: memref<3x32x32xf32, #tpu.memory_space<vmem>>, %arg5: memref<3x32x1xf32, #tpu.memory_space<vmem>>, %arg6: memref<32x1xf32, #tpu.memory_space<vmem>>, %arg7: memref<1x1xf32, #tpu.memory_space<vmem>>, %arg8: memref<1x128xf32, #tpu.memory_space<vmem>>) attributes {dimension_semantics = [#tpu.dimension_semantics<parallel>], iteration_bounds = array<i64: 1>, scalar_prefetch = 0 : i64, scratch_operands = 0 : i64, tpu.core_type = #tpu.core_type<tc>, window_params = [{transform_indices = @transform_0, window_bounds = array<i64: 2, 128>}, {pipeline_mode = #tpu.pipeline_mode<synchronous>, transform_indices = @transform_1, window_bounds = array<i64: 32, 2>}, {pipeline_mode = #tpu.pipeline_mode<synchronous>, transform_indices = @transform_2, window_bounds = array<i64: 32, 1>}, {pipeline_mode = #tpu.pipeline_mode<synchronous>, transform_indices = @transform_3, window_bounds = array<i64: 3, 32, 32>}, {pipeline_mode = #tpu.pipeline_mode<synchronous>, transform_indices = @transform_4, window_bounds = array<i64: 3, 32, 1>}, {pipeline_mode = #tpu.pipeline_mode<synchronous>, transform_indices = @transform_5, window_bounds = array<i64: 32, 1>}, {pipeline_mode = #tpu.pipeline_mode<synchronous>, transform_indices = @transform_6, window_bounds = array<i64: 1, 1>}, {transform_indices = @transform_7, window_bounds = array<i64: 1, 128>}]} {
    %c0 = arith.constant 0 : index
    %c0_0 = arith.constant 0 : index
    %0 = vector.load %arg1[%c0, %c0_0] : memref<2x128xf32, #tpu.memory_space<vmem>>, vector<2x128xf32>
    %c0_1 = arith.constant 0 : index
    %c0_2 = arith.constant 0 : index
    %1 = vector.load %arg2[%c0_1, %c0_2] : memref<32x2xf32, #tpu.memory_space<vmem>>, vector<32x2xf32>
    %2 = vector.extract_strided_slice %1 {offsets = [0, 0], sizes = [32, 1], strides = [1, 1]} : vector<32x2xf32> to vector<32x1xf32>
    %3 = vector.extract_strided_slice %0 {offsets = [0, 0], sizes = [1, 128], strides = [1, 1]} : vector<2x128xf32> to vector<1x128xf32>
    %4 = vector.broadcast %2 : vector<32x1xf32> to vector<32x128xf32>
    %5 = vector.broadcast %3 : vector<1x128xf32> to vector<32x128xf32>
    %6 = arith.mulf %4, %5 : vector<32x128xf32>
    %7 = vector.extract_strided_slice %1 {offsets = [0, 1], sizes = [32, 1], strides = [1, 1]} : vector<32x2xf32> to vector<32x1xf32>
    %8 = vector.extract_strided_slice %0 {offsets = [1, 0], sizes = [1, 128], strides = [1, 1]} : vector<2x128xf32> to vector<1x128xf32>
    %9 = vector.broadcast %7 : vector<32x1xf32> to vector<32x128xf32>
    %10 = vector.broadcast %8 : vector<1x128xf32> to vector<32x128xf32>
    %11 = arith.mulf %9, %10 : vector<32x128xf32>
    %12 = arith.addf %6, %11 : vector<32x128xf32>
    %c0_3 = arith.constant 0 : index
    %c0_4 = arith.constant 0 : index
    %13 = vector.load %arg3[%c0_3, %c0_4] : memref<32x1xf32, #tpu.memory_space<vmem>>, vector<32x1xf32>
    %14 = vector.broadcast %13 : vector<32x1xf32> to vector<32x128xf32>
    %15 = arith.addf %12, %14 : vector<32x128xf32>
    %16 = math.tanh %15 : vector<32x128xf32>
    %c0_5 = arith.constant 0 : index
    %c0_6 = arith.constant 0 : index
    %c0_7 = arith.constant 0 : index
    %17 = vector.load %arg4[%c0_5, %c0_6, %c0_7] : memref<3x32x32xf32, #tpu.memory_space<vmem>>, vector<1x32x32xf32>
    %18 = vector.shape_cast %17 : vector<1x32x32xf32> to vector<32x32xf32>
    %cst = arith.constant dense<0.000000e+00> : vector<32x128xf32>
    %19 = tpu.matmul %18, %16, %cst {dimension_numbers = #tpu.dot_dimension_numbers<[1], [0], [0], [1], [0, 0, 1, 1], [], []>} : vector<32x32xf32>, vector<32x128xf32>, vector<32x128xf32> -> vector<32x128xf32>
    %c0_8 = arith.constant 0 : index
    %c0_9 = arith.constant 0 : index
    %c0_10 = arith.constant 0 : index
    %20 = vector.load %arg5[%c0_8, %c0_9, %c0_10] : memref<3x32x1xf32, #tpu.memory_space<vmem>>, vector<1x32x1xf32>
    %21 = vector.shape_cast %20 : vector<1x32x1xf32> to vector<32x1xf32>
    %22 = vector.broadcast %21 : vector<32x1xf32> to vector<32x128xf32>
    %23 = arith.addf %19, %22 : vector<32x128xf32>
    %24 = math.tanh %23 : vector<32x128xf32>
    %25 = arith.addf %24, %16 : vector<32x128xf32>
    %c1 = arith.constant 1 : index
    %c0_11 = arith.constant 0 : index
    %c0_12 = arith.constant 0 : index
    %26 = vector.load %arg4[%c1, %c0_11, %c0_12] : memref<3x32x32xf32, #tpu.memory_space<vmem>>, vector<1x32x32xf32>
    %27 = vector.shape_cast %26 : vector<1x32x32xf32> to vector<32x32xf32>
    %cst_13 = arith.constant dense<0.000000e+00> : vector<32x128xf32>
    %28 = tpu.matmul %27, %25, %cst_13 {dimension_numbers = #tpu.dot_dimension_numbers<[1], [0], [0], [1], [0, 0, 1, 1], [], []>} : vector<32x32xf32>, vector<32x128xf32>, vector<32x128xf32> -> vector<32x128xf32>
    %c1_14 = arith.constant 1 : index
    %c0_15 = arith.constant 0 : index
    %c0_16 = arith.constant 0 : index
    %29 = vector.load %arg5[%c1_14, %c0_15, %c0_16] : memref<3x32x1xf32, #tpu.memory_space<vmem>>, vector<1x32x1xf32>
    %30 = vector.shape_cast %29 : vector<1x32x1xf32> to vector<32x1xf32>
    %31 = vector.broadcast %30 : vector<32x1xf32> to vector<32x128xf32>
    %32 = arith.addf %28, %31 : vector<32x128xf32>
    %33 = math.tanh %32 : vector<32x128xf32>
    %34 = arith.addf %33, %25 : vector<32x128xf32>
    %c2 = arith.constant 2 : index
    %c0_17 = arith.constant 0 : index
    %c0_18 = arith.constant 0 : index
    %35 = vector.load %arg4[%c2, %c0_17, %c0_18] : memref<3x32x32xf32, #tpu.memory_space<vmem>>, vector<1x32x32xf32>
    %36 = vector.shape_cast %35 : vector<1x32x32xf32> to vector<32x32xf32>
    %cst_19 = arith.constant dense<0.000000e+00> : vector<32x128xf32>
    %37 = tpu.matmul %36, %34, %cst_19 {dimension_numbers = #tpu.dot_dimension_numbers<[1], [0], [0], [1], [0, 0, 1, 1], [], []>} : vector<32x32xf32>, vector<32x128xf32>, vector<32x128xf32> -> vector<32x128xf32>
    %c2_20 = arith.constant 2 : index
    %c0_21 = arith.constant 0 : index
    %c0_22 = arith.constant 0 : index
    %38 = vector.load %arg5[%c2_20, %c0_21, %c0_22] : memref<3x32x1xf32, #tpu.memory_space<vmem>>, vector<1x32x1xf32>
    %39 = vector.shape_cast %38 : vector<1x32x1xf32> to vector<32x1xf32>
    %40 = vector.broadcast %39 : vector<32x1xf32> to vector<32x128xf32>
    %41 = arith.addf %37, %40 : vector<32x128xf32>
    %42 = math.tanh %41 : vector<32x128xf32>
    %43 = arith.addf %42, %34 : vector<32x128xf32>
    %c0_23 = arith.constant 0 : index
    %c0_24 = arith.constant 0 : index
    %44 = vector.load %arg6[%c0_23, %c0_24] : memref<32x1xf32, #tpu.memory_space<vmem>>, vector<32x1xf32>
    %45 = vector.broadcast %44 : vector<32x1xf32> to vector<32x128xf32>
    %46 = arith.mulf %45, %43 : vector<32x128xf32>
    %cst_25 = arith.constant dense<0.000000e+00> : vector<128xf32>
    %47 = vector.multi_reduction <add>, %46, %cst_25 [0] : vector<32x128xf32> to vector<128xf32>
    %48 = vector.shape_cast %47 : vector<128xf32> to vector<1x128xf32>
    %c0_26 = arith.constant 0 : index
    %c0_27 = arith.constant 0 : index
    %49 = vector.load %arg7[%c0_26, %c0_27] : memref<1x1xf32, #tpu.memory_space<vmem>>, vector<1x1xf32>
    %50 = vector.broadcast %49 : vector<1x1xf32> to vector<1x128xf32>
    %51 = arith.addf %48, %50 : vector<1x128xf32>
    %c0_28 = arith.constant 0 : index
    %c0_29 = arith.constant 0 : index
    %52 = vector.load %arg8[%c0_28, %c0_29] : memref<1x128xf32, #tpu.memory_space<vmem>>, vector<1x128xf32>
    tpu.vector_store %arg8[%c0_28, %c0_29], %51 {strides = array<i32>} : memref<1x128xf32, #tpu.memory_space<vmem>>, vector<1x128xf32>,
    return
  }
  func.func @transform_0(%arg0: i32) -> (i32, i32) {
    %c0_i32 = arith.constant 0 : i32
    %c0_i32_0 = arith.constant 0 : i32
    return %c0_i32, %arg0 : i32, i32
  }
  func.func @transform_1(%arg0: i32) -> (i32, i32) {
    %c0_i32 = arith.constant 0 : i32
    %c0_i32_0 = arith.constant 0 : i32
    %c0_i32_1 = arith.constant 0 : i32
    return %c0_i32, %c0_i32_0 : i32, i32
  }
  func.func @transform_2(%arg0: i32) -> (i32, i32) {
    %c0_i32 = arith.constant 0 : i32
    %c0_i32_0 = arith.constant 0 : i32
    %c0_i32_1 = arith.constant 0 : i32
    return %c0_i32, %c0_i32_0 : i32, i32
  }
  func.func @transform_3(%arg0: i32) -> (i32, i32, i32) {
    %c0_i32 = arith.constant 0 : i32
    %c0_i32_0 = arith.constant 0 : i32
    %c0_i32_1 = arith.constant 0 : i32
    %c0_i32_2 = arith.constant 0 : i32
    return %c0_i32, %c0_i32_0, %c0_i32_1 : i32, i32, i32
  }
  func.func @transform_4(%arg0: i32) -> (i32, i32, i32) {
    %c0_i32 = arith.constant 0 : i32
    %c0_i32_0 = arith.constant 0 : i32
    %c0_i32_1 = arith.constant 0 : i32
    %c0_i32_2 = arith.constant 0 : i32
    return %c0_i32, %c0_i32_0, %c0_i32_1 : i32, i32, i32
  }
  func.func @transform_5(%arg0: i32) -> (i32, i32) {
    %c0_i32 = arith.constant 0 : i32
    %c0_i32_0 = arith.constant 0 : i32
    %c0_i32_1 = arith.constant 0 : i32
    return %c0_i32, %c0_i32_0 : i32, i32
  }
  func.func @transform_6(%arg0: i32) -> (i32, i32) {
    %c0_i32 = arith.constant 0 : i32
    %c0_i32_0 = arith.constant 0 : i32
    %c0_i32_1 = arith.constant 0 : i32
    return %c0_i32, %c0_i32_0 : i32, i32
  }
  func.func @transform_7(%arg0: i32) -> (i32, i32) {
    %c0_i32 = arith.constant 0 : i32
    %c0_i32_0 = arith.constant 0 : i32
    return %c0_i32, %arg0 : i32, i32
  }
}

</mosaic_0001>

<bundles_post_ra>
// kernel: tpu_custom_call.1
= control target key start
LH: loop header
LB: loop body
LE: loop exit
PB: predicated region body
PF: predicated region fallthrough
CT: control target
= control target key end

     0   :  { %s696_s0 = inlined_call_operand.vmem [shape: f32[2,128], index: 0, kind: input, shape index: {}]   ;;  %s697_s1 = inlined_call_operand.vmem [shape: f32[32,2], index: 1, kind: input, shape index: {}]   ;;  %s698_s2 = inlined_call_operand.vmem [shape: f32[32,1], index: 2, kind: input, shape index: {}]   ;;  %s699_s3 = inlined_call_operand.vmem [shape: f32[3,32,32], index: 3, kind: input, shape index: {}]   ;;  %s700_s4 = inlined_call_operand.vmem [shape: f32[3,32,1], index: 4, kind: input, shape index: {}]   ;;  %s701_s5 = inlined_call_operand.vmem [shape: f32[32,1], index: 5, kind: input, shape index: {}]   ;;  %s702_s6 = inlined_call_operand.<no memory space> [shape: f32[1,1], index: 6, kind: input, shape index: {}]   ;;  %s703_s7 = inlined_call_operand.hbm [shape: f32[1,128], index: 7, kind: output, shape index: {}]  }
   0x1   :  { %v12_v0 = vstv %s702_s6 }
   0x2   :  { %13 = vst [vmem:[#allocation2] sm:$0x1] %v12_v0 }
   0x3   :  { %v33_v1 = vld [vmem:[%s697_s1 + $0x18] sm:$0xff]  ;;  %v32_v2 = vld [vmem:[%s697_s1 + $0x10] sm:$0xff]  ;;  %v31_v3 = vld [vmem:[%s697_s1 + $0x8] sm:$0xff]  ;;  %v524_v4 = vmov 0  }
   0x4   :  { %461 = vset.pattern.permute.xlu2 %v524_v4  ;;  %459 = vset.pattern.permute.xlu1 %v524_v4 }
   0x5   :  { %457 = vset.pattern.permute.xlu0 %v524_v4  ;;  %46 = vperm.xlu1 %459, %v32_v2  }
   0x6   :  { %51 = vperm.xlu0 %457, %v33_v1   ;;  %41 = vperm.xlu2 %461, %v31_v3  }
   0x7   :  { %14 = vsyncpa [#allocation4], 0  ;;  %v525_v5 = vmov 1   ;;  %v30_v6 = vld [vmem:[%s697_s1] sm:$0xff]  ;;  %v87_v7 = vld [vmem:[%s698_s2 + $0x18] sm:$0xff]  ;;  %vm144_vm0 = vcmask 261120  }
   0x8   :  { %v86_v8 = vld [vmem:[%s698_s2 + $0x10] sm:$0xff]  ;;  %v84_v9 = vld [vmem:[%s698_s2] sm:$0xff]  ;;  %v85_v10 = vld [vmem:[%s698_s2 + $0x8] sm:$0xff] }
   0x9   :  { %v123_v11 = vld [vmem:[%s700_s4 + $0x18] sm:$0xff]  ;;  %v122_v13 = vld [vmem:[%s700_s4 + $0x10] sm:$0xff]  ;;  %v121_v14 = vld [vmem:[%s700_s4 + $0x8] sm:$0xff] }
   0xa   :  { %v425_v12 = vld [vmem:[%s700_s4 + $0x38] sm:$0xff]  ;;  %v422_v15 = vld [vmem:[%s700_s4 + $0x20] sm:$0xff]  ;;  %v424_v17 = vld [vmem:[%s700_s4 + $0x30] sm:$0xff] }
   0xb   :  { %v120_v16 = vld [vmem:[%s700_s4] sm:$0xff]  ;;  %v436_v18 = vld [vmem:[%s700_s4 + $0x50] sm:$0xff]  ;;  %v423_v19 = vld [vmem:[%s700_s4 + $0x28] sm:$0xff] }
   0xc   :  { %v434_v20 = vld [vmem:[%s700_s4 + $0x40] sm:$0xff]  ;;  %v353_v21 = vld [vmem:[%s701_s5 + $0x8] sm:$0xff]  ;;  %v437_v23 = vld [vmem:[%s700_s4 + $0x58] sm:$0xff] }
   0xd   :  { %460 = vset.pattern.permute.xlu1 %v525_v5  ;;  %v435_v22 = vld [vmem:[%s700_s4 + $0x48] sm:$0xff]  ;;  %v389_v24 = vld [vmem:[#allocation2] sm:$0x1]  ;;  %v354_v26 = vld [vmem:[%s701_s5 + $0x10] sm:$0xff]  ;;  %s405_s4 = sshll.u32 %s703_s7, 4  ;;  %s406_s4 = int_to_ptr.hbm [resolvable:$true] %s405_s4 }
   0xe   :  { %458 = vset.pattern.permute.xlu0 %v525_v5  ;;  %462 = vset.pattern.permute.xlu2 %v525_v5  ;;  %v352_v25 = vld [vmem:[%s701_s5] sm:$0xff]  ;;  %v355_v27 = vld [vmem:[%s701_s5 + $0x18] sm:$0xff]  ;;  %v117_v63 = vld [vmem:[%s699_s3 + $0x8] sm:$0xff] }
   0xf   :  { %72 = vperm.xlu0 %458, %v33_v1   ;;  %68 = vperm.xlu1 %460, %v32_v2   ;;  %v29_v34 = vld [vmem:[%s696_s0] sm:$0x3]  ;;  %v118_v1 = vld [vmem:[%s699_s3 + $0x10] sm:$0xff]  ;;  %v119_v2 = vld [vmem:[%s699_s3 + $0x18] sm:$0xff] }
  0x10   :  { %64 = vperm.xlu2 %462, %v31_v3   ;;  %v75_v35 = vperm.slane %v29_v34, 1  ;;  %v54_v36 = vperm.slane %v29_v34, 0  ;;  %v116_v62 = vld [vmem:[%s699_s3] sm:$0xff] }
  0x17   :  { %463 = vset.pattern.permute.xlu1 %v524_v4  ;;  %60 = vperm.xlu0 %458, %v30_v6  }
  0x18   :  { %464 = vset.pattern.permute.xlu2 %v524_v4  ;;  %105 = vperm.xlu1 %463, %v87_v7  }
  0x19   :  { %36 = vperm.xlu2 %464, %v30_v6  }
  0x1f   :  { %465 = vset.pattern.permute.xlu0 %v524_v4 }
  0x20   :  { %100 = vperm.xlu1 %463, %v86_v8   ;;  %90 = vperm.xlu0 %465, %v84_v9  }
  0x21   :  { %95 = vperm.xlu2 %464, %v85_v10  }
  0x28   :  { %141 = vperm.xlu1 %463, %v123_v11   ;;  %221 = vperm.xlu0 %465, %v425_v12  }
  0x29   :  { %136 = vperm.xlu2 %464, %v122_v13  }
  0x30   :  { %131 = vperm.xlu1 %463, %v121_v14   ;;  %206 = vperm.xlu0 %465, %v422_v15  }
  0x31   :  { %126 = vperm.xlu2 %464, %v120_v16  }
  0x38   :  { %216 = vperm.xlu1 %463, %v424_v17   ;;  %295 = vperm.xlu0 %465, %v436_v18  }
  0x39   :  { %211 = vperm.xlu2 %464, %v423_v19  }
  0x40   :  { %285 = vperm.xlu1 %463, %v434_v20   ;;  %363 = vperm.xlu0 %465, %v353_v21  }
  0x41   :  { %290 = vperm.xlu2 %464, %v435_v22  }
  0x48   :  { %300 = vperm.xlu1 %463, %v437_v23   ;;  %392 = vperm.xlu0 %465, %v389_v24   ;;  %v418_v23 = vld [vmem:[%s699_s3 + $0x20] sm:$0xff]  ;;  %v419_v24 = vld [vmem:[%s699_s3 + $0x28] sm:$0xff] }
  0x49   :  { %358 = vperm.xlu2 %464, %v352_v25   ;;  %v420_v25 = vld [vmem:[%s699_s3 + $0x30] sm:$0xff] }
  0x50   :  { %368 = vperm.xlu1 %463, %v354_v26   ;;  %v421_v26 = vld [vmem:[%s699_s3 + $0x38] sm:$0xff] }
  0x51   :  { %373 = vperm.xlu2 %464, %v355_v27  }
  0x60   :  { %v42_v28 = vpop.permute.xlu2 %41 }
  0x61   :  { %v56_v43 = vmul.f32 %v54_v36, %v42_v28 }
  0x6a   :  { %v65_v31 = vpop.permute.xlu2 %64 }
  0x6b   :  { %v77_v44 = vmul.f32 %v75_v35, %v65_v31 }
  0x6d   :  { %v81_v49 = vadd.f32 %v77_v44, %v56_v43 }
  0x73   :  { %v37_v38 = vpop.permute.xlu2 %36 }
  0x74   :  { %v55_v47 = vmul.f32 %v54_v36, %v37_v38 }
  0x77   :  { %v47_v29 = vpop.permute.xlu1 %46 }
  0x78   :  { %v52_v30 = vpop.permute.xlu0 %51  ;;  %v57_v48 = vmul.f32 %v54_v36, %v47_v29 }
  0x79   :  { %v58_v39 = vmul.f32 %v54_v36, %v52_v30 }
  0x7b   :  { %v96_v51 = vpop.permute.xlu2 %95 }
  0x7c   :  { %v109_v56 = vadd.f32 %v96_v51, %v81_v49  ;;  %v432_v49 = vld [vmem:[%s699_s3 + $0x50] sm:$0xff] }
  0x81   :  { %v73_v32 = vpop.permute.xlu0 %72  ;;  %v69_v33 = vpop.permute.xlu1 %68 }
  0x82   :  { %v79_v37 = vmul.f32 %v75_v35, %v73_v32  ;;  %v78_v46 = vmul.f32 %v75_v35, %v69_v33 }
  0x83   :  { %v137_v5 = vpop.permute.xlu2 %136 }
  0x84   :  { %v83_v41 = vadd.f32 %v79_v37, %v58_v39  ;;  %v82_v52 = vadd.f32 %v78_v46, %v57_v48  ;;  %v431_v48 = vld [vmem:[%s699_s3 + $0x48] sm:$0xff] }
  0x89   :  { %v61_v40 = vpop.permute.xlu0 %60 }
  0x8a   :  { %v106_v42 = vpop.permute.xlu1 %105  ;;  %v76_v50 = vmul.f32 %v75_v35, %v61_v40 }
  0x8b   :  { %v111_v45 = vadd.f32 %v106_v42, %v83_v41  ;;  %v127_v13 = vpop.permute.xlu2 %126 }
  0x8c   :  { %v80_v58 = vadd.f32 %v76_v50, %v55_v47  ;;  %v430_v47 = vld [vmem:[%s699_s3 + $0x40] sm:$0xff]  ;;  %v433_v50 = vld [vmem:[%s699_s3 + $0x58] sm:$0xff]  ;;  %s526_s3 = smov [#allocation3]  }
  0x8d   :  { %466 = vtanh.f32 %v111_v45  ;;  %s403_s20 = sshll.u32 %s526_s3, 4  ;;  %s404_s20 = int_to_ptr.vmem [resolvable:$true] %s403_s20 }
  0x92   :  { %v101_v53 = vpop.permute.xlu1 %100  ;;  %v91_v54 = vpop.permute.xlu0 %90 }
  0x93   :  { %v467_v55 = vpop.eup %466  ;;  %v110_v57 = vadd.f32 %v101_v53, %v82_v52  ;;  %v108_v59 = vadd.f32 %v91_v54, %v80_v58  ;;  %v212_v32 = vpop.permute.xlu2 %211 }
  0x94   :  { %169 = vmatpush.msra.mxu0 %v467_v55  ;;  %442 = vmatpush.msra.mxu3 %v467_v55 }
  0x95   :  { %468 = vtanh.f32 %v110_v57 }
  0x96   :  { %470 = vtanh.f32 %v109_v56 }
  0x97   :  { %472 = vtanh.f32 %v108_v59 }
  0x9a   :  { %v142_v4 = vpop.permute.xlu1 %141  ;;  %v222_v28 = vpop.permute.xlu0 %221 }
  0x9b   :  { %v469_v60 = vpop.eup %468  ;;  %v291_v54 = vpop.permute.xlu2 %290 }
  0x9c   :  { %170 = vmatpush.msra.mxu0 %v469_v60  ;;  %443 = vmatpush.msra.mxu3 %v469_v60  ;;  %v471_v61 = vpop.eup %470 }
  0x9d   :  { %v473_v0 = vpop.eup %472 }
  0x9e   :  { %171 = vmatpush.msra.mxu0 %v471_v61  ;;  %444 = vmatpush.msra.mxu3 %v471_v61 }
  0xa0   :  { %172 = vmatpush.msra.mxu0 %v473_v0  ;;  %445 = vmatpush.msra.mxu3 %v473_v0 }
  0xa1   :  { %414 = vmatmul.msk.f32.vlgmr.msra.gmra.mxu0 %vm144_vm0, %v116_v62  ;;  %415 = vmatmul.msk.f32.vlgmr.msra.gmra.mxu3 %vm144_vm0, %v117_v63 }
  0xa2   :  { %v132_v8 = vpop.permute.xlu1 %131  ;;  %v207_v37 = vpop.permute.xlu0 %206 }
  0xa9   :  { %416 = vmatmul.msk.f32.gmra.mxu3 %vm144_vm0, %v118_v1  ;;  %v359_v1 = vpop.permute.xlu2 %358 }
  0xaa   :  { %v217_v30 = vpop.permute.xlu1 %216  ;;  %v296_v57 = vpop.permute.xlu0 %295 }
  0xb1   :  { %417 = vmatmul.msk.f32.gmra.mxu3 %vm144_vm0, %v119_v2 }
  0xb2   :  { %v286_v52 = vpop.permute.xlu1 %285 }
 0x11e   :  { %v174_v9 = vpop.f32.mrf.mxu0 }
 0x11f   :  { %v175_v14 = vadd.f32 %v174_v9, %v127_v13 }
 0x124   :  { %v177_v3 = vpop.f32.mrf.mxu3 }
 0x125   :  { %v178_v11 = vadd.f32 %v177_v3, %v132_v8 }
 0x12c   :  { %v180_v6 = vpop.f32.mrf.mxu3 }
 0x12d   :  { %v181_v7 = vadd.f32 %v180_v6, %v137_v5  ;;  %v364_v6 = vpop.permute.xlu0 %363 }
 0x12f   :  { %474 = vtanh.f32 %v181_v7 }
 0x134   :  { %v183_v10 = vpop.f32.mrf.mxu3 }
 0x135   :  { %v184_v12 = vadd.f32 %v183_v10, %v142_v4  ;;  %v475_v15 = vpop.eup %474 }
 0x136   :  { %v192_v19 = vadd.f32 %v475_v15, %v469_v60  ;;  %v301_v60 = vpop.permute.xlu1 %300 }
 0x137   :  { %476 = vtanh.f32 %v184_v12 }
 0x138   :  { %478 = vtanh.f32 %v178_v11 }
 0x139   :  { %480 = vtanh.f32 %v175_v14  ;;  %v374_v14 = vpop.permute.xlu2 %373 }
 0x13d   :  { %v477_v16 = vpop.eup %476 }
 0x13e   :  { %v193_v17 = vadd.f32 %v477_v16, %v467_v55  ;;  %v479_v18 = vpop.eup %478  ;;  %v369_v8 = vpop.permute.xlu1 %368 }
 0x13f   :  { %v481_v20 = vpop.eup %480  ;;  %v191_v21 = vadd.f32 %v479_v18, %v471_v61 }
 0x140   :  { %248 = vmatpush.msrb.mxu0 %v193_v17  ;;  %446 = vmatpush.msra.mxu1 %v193_v17  ;;  %v190_v22 = vadd.f32 %v481_v20, %v473_v0 }
 0x142   :  { %249 = vmatpush.msrb.mxu0 %v192_v19  ;;  %447 = vmatpush.msra.mxu1 %v192_v19 }
 0x144   :  { %250 = vmatpush.msrb.mxu0 %v191_v21  ;;  %448 = vmatpush.msra.mxu1 %v191_v21 }
 0x146   :  { %251 = vmatpush.msrb.mxu0 %v190_v22  ;;  %449 = vmatpush.msra.mxu1 %v190_v22 }
 0x147   :  { %426 = vmatmul.msk.f32.vlgmr.msrb.gmra.mxu0 %vm144_vm0, %v418_v23  ;;  %427 = vmatmul.msk.f32.vlgmr.msra.gmra.mxu1 %vm144_vm0, %v419_v24 }
 0x14f   :  { %428 = vmatmul.msk.f32.gmra.mxu1 %vm144_vm0, %v420_v25 }
 0x157   :  { %429 = vmatmul.msk.f32.gmra.mxu1 %vm144_vm0, %v421_v26 }
 0x1c4   :  { %v256_v27 = vpop.f32.mrf.mxu1  ;;  %v253_v33 = vpop.f32.mrf.mxu0 }
 0x1c5   :  { %v257_v35 = vadd.f32 %v256_v27, %v212_v32  ;;  %v254_v38 = vadd.f32 %v253_v33, %v207_v37 }
 0x1cc   :  { %v259_v29 = vpop.f32.mrf.mxu1 }
 0x1cd   :  { %v260_v31 = vadd.f32 %v259_v29, %v217_v30 }
 0x1cf   :  { %482 = vtanh.f32 %v260_v31 }
 0x1d4   :  { %v262_v34 = vpop.f32.mrf.mxu1 }
 0x1d5   :  { %v263_v36 = vadd.f32 %v262_v34, %v222_v28  ;;  %v483_v39 = vpop.eup %482 }
 0x1d6   :  { %v271_v43 = vadd.f32 %v483_v39, %v192_v19 }
 0x1d7   :  { %484 = vtanh.f32 %v263_v36 }
 0x1d8   :  { %486 = vtanh.f32 %v257_v35 }
 0x1d9   :  { %488 = vtanh.f32 %v254_v38 }
 0x1dd   :  { %v485_v40 = vpop.eup %484 }
 0x1de   :  { %v272_v41 = vadd.f32 %v485_v40, %v193_v17  ;;  %v487_v42 = vpop.eup %486 }
 0x1df   :  { %v489_v44 = vpop.eup %488  ;;  %v270_v45 = vadd.f32 %v487_v42, %v191_v21 }
 0x1e0   :  { %327 = vmatpush.msra.mxu0 %v272_v41  ;;  %450 = vmatpush.msra.mxu2 %v272_v41  ;;  %v269_v46 = vadd.f32 %v489_v44, %v190_v22  ;;  %v393_v22 = vpop.permute.xlu0 %392 }
 0x1e1   :  { %v395_v24 = vperm.slane %v393_v22, 0 }
 0x1e2   :  { %328 = vmatpush.msra.mxu0 %v271_v43  ;;  %451 = vmatpush.msra.mxu2 %v271_v43 }
 0x1e4   :  { %329 = vmatpush.msra.mxu0 %v270_v45  ;;  %452 = vmatpush.msra.mxu2 %v270_v45 }
 0x1e6   :  { %330 = vmatpush.msra.mxu0 %v269_v46  ;;  %453 = vmatpush.msra.mxu2 %v269_v46 }
 0x1e7   :  { %438 = vmatmul.msk.f32.vlgmr.msra.gmra.mxu0 %vm144_vm0, %v430_v47  ;;  %439 = vmatmul.msk.f32.vlgmr.msra.gmra.mxu2 %vm144_vm0, %v431_v48 }
 0x1ef   :  { %440 = vmatmul.msk.f32.gmra.mxu2 %vm144_vm0, %v432_v49 }
 0x1f7   :  { %441 = vmatmul.msk.f32.gmra.mxu2 %vm144_vm0, %v433_v50 }
 0x264   :  { %v332_v53 = vpop.f32.mrf.mxu0 }
 0x265   :  { %v333_v56 = vadd.f32 %v332_v53, %v286_v52 }
 0x26a   :  { %v335_v51 = vpop.f32.mrf.mxu2 }
 0x26b   :  { %v336_v55 = vadd.f32 %v335_v51, %v291_v54 }
 0x26d   :  { %490 = vtanh.f32 %v336_v55 }
 0x26e   :  { %492 = vtanh.f32 %v333_v56 }
 0x272   :  { %v338_v58 = vpop.f32.mrf.mxu2 }
 0x273   :  { %v339_v59 = vadd.f32 %v338_v58, %v296_v57  ;;  %v491_v61 = vpop.eup %490 }
 0x274   :  { %v493_v62 = vpop.eup %492  ;;  %v349_v3 = vadd.f32 %v491_v61, %v270_v45 }
 0x275   :  { %494 = vtanh.f32 %v339_v59  ;;  %v348_v4 = vadd.f32 %v493_v62, %v269_v46 }
 0x276   :  { %v377_v7 = vmul.f32 %v364_v6, %v349_v3 }
 0x277   :  { %v376_v9 = vmul.f32 %v359_v1, %v348_v4 }
 0x279   :  { %v380_v12 = vadd.f32 %v377_v7, %v376_v9 }
 0x27a   :  { %v341_v63 = vpop.f32.mrf.mxu2 }
 0x27b   :  { %v495_v0 = vpop.eup %494  ;;  %v342_v2 = vadd.f32 %v341_v63, %v301_v60 }
 0x27c   :  { %v350_v5 = vadd.f32 %v495_v0, %v271_v43 }
 0x27d   :  { %496 = vtanh.f32 %v342_v2 }
 0x27e   :  { %v378_v10 = vmul.f32 %v369_v8, %v350_v5 }
 0x280   :  { %v381_v15 = vadd.f32 %v380_v12, %v378_v10 }
 0x283   :  { %v497_v11 = vpop.eup %496 }
 0x284   :  { %v351_v13 = vadd.f32 %v497_v11, %v272_v41 }
 0x286   :  { %v379_v16 = vmul.f32 %v374_v14, %v351_v13 }
 0x288   :  { %v382_v17 = vadd.f32 %v381_v15, %v379_v16 }
 0x28a   :  { %v383_v18 = vrot.slane %v382_v17, 4 }
 0x28c   :  { %v384_v19 = vadd.f32 %v383_v18, %v382_v17 }
 0x28e   :  { %v385_v20 = vrot.slane %v384_v19, 2 }
 0x290   :  { %v386_v21 = vadd.f32 %v385_v20, %v384_v19 }
 0x292   :  { %v387_v23 = vrot.slane %v386_v21, 1 }
 0x294   :  { %v388_v25 = vadd.f32 %v387_v23, %v386_v21 }
 0x296   :  { %v396_v26 = vadd.f32 %v395_v24, %v388_v25 }
 0x298   :  { %397 = vst [vmem:[#allocation3] sm:$0x1] %v396_v26 }
 0x299   :  { %408 = dma.vmem_to_hbm [thread:$0]  %s404_s20, 16, %s406_s4, [#allocation4]  }
 0x29a   :  { %522 = dma.done.wait [#allocation4], 16  }
 0x29b   :  { %523 = vsyncadd [#allocation4], 4294967280 }
 0x29c   :  { %413 = vsyncpa [#allocation4], 1 }

</bundles_post_ra>
